<compile_context>
chip_gen: v7x
topology: tpu7x:2x2x1
jax: 0.10.0
libtpu: 0.0.40
codegen_flags: <defaults>
</compile_context>

<pallas_src>
import functools

import jax
import jax.numpy as jnp
from jax import lax
from jax.experimental import pallas as pl
from jax.experimental.pallas import tpu as pltpu

IN_DIM = 80


def _round_up(a, m):
    return ((a + m - 1) // m) * m


def _fused_attn_kernel(xq_ref, xk_ref, wT_ref, o_ref,
                       q_sc, m_sc, l_sc, acc_sc,
                       *, seq_len, tile_k, scale, mxu_dtype):
    ki = pl.program_id(1)
    wT = wT_ref[...]                                    # (d, 81): bias fused as last col

    @pl.when(ki == 0)
    def _():
        # Project this q-row tile once per q tile (resident across the k axis) and
        # fold the sqrt(d_k) score scale into it.
        q = lax.dot_general(xq_ref[...], wT, (((1,), (1,)), ((), ())),
                            preferred_element_type=jnp.float32)
        q_sc[...] = q * jnp.float32(scale)
        m_sc[...] = jnp.full_like(m_sc, -jnp.inf)
        l_sc[...] = jnp.zeros_like(l_sc)
        acc_sc[...] = jnp.zeros_like(acc_sc)

    # k/v tile: recompute the fused projection from x (cheap vs. the EUP-bound exp).
    kv = lax.dot_general(xk_ref[...], wT, (((1,), (1,)), ((), ())),
                         preferred_element_type=jnp.float32)        # (tile_k, d)
    kv_m = kv.astype(mxu_dtype)

    # Scores: contract the head dim of both operands (no transposed tile / relayout).
    s = lax.dot_general(q_sc[...].astype(mxu_dtype), kv_m,
                        (((1,), (1,)), ((), ())),
                        preferred_element_type=jnp.float32)         # (tile_q, tile_k)

    # Mask k rows beyond the true batch (row padding up to the tile multiple).
    col = ki * tile_k + lax.broadcasted_iota(jnp.int32, s.shape, 1)
    s = jnp.where(col < seq_len, s, -jnp.inf)

    # Online softmax.  The denominator is folded into the (tile, d) output at the end,
    # never into the (tile_q, tile_k) probability matrix (saves a full B^2 VPU pass).
    m_prev = m_sc[...]
    m_new = jnp.maximum(m_prev, jnp.max(s, axis=-1, keepdims=True))
    alpha = jnp.exp(m_prev - m_new)
    e = jnp.exp(s - m_new)                                          # EUP-bound at large B
    l_sc[...] = alpha * l_sc[...] + jnp.sum(e, axis=-1, keepdims=True)
    acc_sc[...] = alpha * acc_sc[...] + jnp.dot(e.astype(mxu_dtype), kv_m,
                                                preferred_element_type=jnp.float32)
    m_sc[...] = m_new

    @pl.when(ki == pl.num_programs(1) - 1)
    def _():
        # Exact reciprocal: EUP has slack and this avoids the ~1e-3 approx error.
        o_ref[...] = (acc_sc[...] * pl.reciprocal(l_sc[...], approx=False)
                      ).astype(o_ref.dtype)


def pack_params(w0, b0, w1, b1):
    """Fuse the two Linear layers and pack [W_fused^T | b_fused] as one (8, 81) tile."""
    w_fused = w0 @ w1                                   # (80, 8)
    b_fused = b0 @ w1 + b1                              # (8,)
    return jnp.concatenate([w_fused.T, b_fused[:, None]], axis=1).astype(jnp.float32)


def model_forward(x, wT_packed, *, tile=256, use_bf16_matmul=None):
    """out = softmax((qk @ qk^T) * sqrt(d)) @ qk, with qk = proj1(proj0(x)) fused."""
    B, in_dim = x.shape
    d, aug = wT_packed.shape
    assert aug == in_dim + 1

    tile = int(min(tile, _round_up(max(B, 1), 8)))
    b_pad = _round_up(B, tile)

    if use_bf16_matmul is None:
        use_bf16_matmul = B >= 512           # bf16 MXU operands only pay off at large B
    mxu_dtype = jnp.bfloat16 if use_bf16_matmul else jnp.float32

    # Augment x with a ones column (carries the fused bias) and pad rows to a tile
    # multiple so every block read is in-bounds; padded k rows are masked in-kernel.
    x_aug = jnp.concatenate(
        [x.astype(jnp.float32), jnp.ones((B, 1), jnp.float32)], axis=1)
    if b_pad != B:
        x_aug = jnp.pad(x_aug, ((0, b_pad - B), (0, 0)))

    grid = (b_pad // tile, b_pad // tile)
    kernel = functools.partial(_fused_attn_kernel,
                               seq_len=B, tile_k=tile,
                               scale=float(d) ** 0.5, mxu_dtype=mxu_dtype)

    out = pl.pallas_call(
        kernel,
        out_shape=jax.ShapeDtypeStruct((b_pad, d), jnp.float32),
        grid_spec=pltpu.PrefetchScalarGridSpec(
            num_scalar_prefetch=0,
            grid=grid,
            in_specs=[
                pl.BlockSpec((tile, aug), lambda qi, ki: (qi, 0)),  # q rows of x_aug
                pl.BlockSpec((tile, aug), lambda qi, ki: (ki, 0)),  # k rows of x_aug
                pl.BlockSpec((d, aug), lambda qi, ki: (0, 0)),      # fused W^T (resident)
            ],
            out_specs=pl.BlockSpec((tile, d), lambda qi, ki: (qi, 0)),
            scratch_shapes=[
                pltpu.VMEM((tile, d), jnp.float32),   # scaled q tile
                pltpu.VMEM((tile, 1), jnp.float32),   # running row max
                pltpu.VMEM((tile, 1), jnp.float32),   # running denominator
                pltpu.VMEM((tile, d), jnp.float32),   # output accumulator
            ],
        ),
        compiler_params=pltpu.CompilerParams(
            dimension_semantics=("parallel", "arbitrary"),
            vmem_limit_bytes=32 * 1024 * 1024,
        ),
    )(x_aug, x_aug, wT_packed)
    return out[:B]


def init_params(key, num_heads=1):
    in_dim = IN_DIM
    hid = num_heads * 8
    k0, k1, k2, k3 = jax.random.split(key, 4)
    bound0 = 1.0 / (in_dim ** 0.5)
    bound1 = 1.0 / (hid ** 0.5)
    w0 = jax.random.uniform(k0, (in_dim, hid), jnp.float32, -bound0, bound0)
    b0 = jax.random.uniform(k1, (hid,), jnp.float32, -bound0, bound0)
    w1 = jax.random.uniform(k2, (hid, hid), jnp.float32, -bound1, bound1)
    b1 = jax.random.uniform(k3, (hid,), jnp.float32, -bound1, bound1)
    return w0, b0, w1, b1


def reference_forward(x, w0, b0, w1, b1):
    v1 = x @ w0 + b0
    qk = v1 @ w1 + b1
    d_k = qk.shape[-1]
    s = (qk @ qk.T) / (d_k ** -0.5)          # same (buggy) scaling as the source model
    p = jax.nn.softmax(s, axis=-1)
    return p @ qk


if __name__ == "__main__":
    key = jax.random.PRNGKey(0)
    kx, kp = jax.random.split(key)
    w0, b0, w1, b1 = init_params(kp, num_heads=1)

    # one-time parameter fusion/packing (off the per-call path)
    wT_packed = jax.block_until_ready(pack_params(w0, b0, w1, b1))

    # 1) shipped shape from the spec: x1 = randn(2, 80)
    x = jax.random.normal(kx, (2, 80), jnp.float32)
    out = jax.block_until_ready(model_forward(x, wT_packed))
    ref = reference_forward(x, w0, b0, w1, b1)
    assert out.shape == (2, 8)
    assert jnp.allclose(out, ref, atol=1e-3, rtol=1e-3), (out, ref)

    # 2) multi-tile sanity check: exercises the (parallel, arbitrary) grid,
    #    online softmax carry and the k-row padding mask.
    xb = jax.random.normal(jax.random.PRNGKey(3), (300, 80), jnp.float32)
    outb = jax.block_until_ready(model_forward(xb, wT_packed, tile=128))
    refb = reference_forward(xb, w0, b0, w1, b1)
    assert outb.shape == (300, 8)
    assert jnp.allclose(outb, refb, atol=1e-3, rtol=1e-3)

    print("KERNEL_OK")
</pallas_src>

<mosaic_0001>
module attributes {stable_mosaic.version = 11 : i64} {
  func.func @_fused_attn_kernel(%arg0: i32, %arg1: i32, %arg2: memref<8x81xf32, #tpu.memory_space<vmem>>, %arg3: memref<8x81xf32, #tpu.memory_space<vmem>>, %arg4: memref<8x81xf32, #tpu.memory_space<vmem>>, %arg5: memref<8x8xf32, #tpu.memory_space<vmem>>, %arg6: memref<8x8xf32, #tpu.memory_space<vmem>>, %arg7: memref<8x1xf32, #tpu.memory_space<vmem>>, %arg8: memref<8x1xf32, #tpu.memory_space<vmem>>, %arg9: memref<8x8xf32, #tpu.memory_space<vmem>>) attributes {dimension_semantics = [#tpu.dimension_semantics<parallel>, #tpu.dimension_semantics<arbitrary>], iteration_bounds = array<i64: 1, 1>, scalar_prefetch = 0 : i64, scratch_operands = 4 : i64, tpu.core_type = #tpu.core_type<tc>, window_params = [{transform_indices = @transform_0, window_bounds = array<i64: 8, 81>}, {transform_indices = @transform_1, window_bounds = array<i64: 8, 81>}, {pipeline_mode = #tpu.pipeline_mode<synchronous>, transform_indices = @transform_2, window_bounds = array<i64: 8, 81>}, {transform_indices = @transform_3, window_bounds = array<i64: 8, 8>}]} {
    %c0 = arith.constant 0 : index
    %c0_0 = arith.constant 0 : index
    %0 = vector.load %arg4[%c0, %c0_0] : memref<8x81xf32, #tpu.memory_space<vmem>>, vector<8x81xf32>
    %c0_i32 = arith.constant 0 : i32
    %1 = arith.cmpi eq, %arg1, %c0_i32 : i32
    %2 = arith.extui %1 : i1 to i32
    %c0_i32_1 = arith.constant 0 : i32
    %3 = arith.cmpi ne, %2, %c0_i32_1 : i32
    scf.if %3 {
      %c0_25 = arith.constant 0 : index
      %c0_26 = arith.constant 0 : index
      %41 = vector.load %arg2[%c0_25, %c0_26] : memref<8x81xf32, #tpu.memory_space<vmem>>, vector<8x81xf32>
      %cst_27 = arith.constant dense<0.000000e+00> : vector<8x8xf32>
      %42 = tpu.matmul %41, %0, %cst_27 {dimension_numbers = #tpu.dot_dimension_numbers<[1], [1], [0], [0], [0, 0, 1, 0], [], []>} : vector<8x81xf32>, vector<8x81xf32>, vector<8x8xf32> -> vector<8x8xf32>
      %cst_28 = arith.constant 2.82842708 : f32
      %43 = vector.broadcast %cst_28 : f32 to vector<8x8xf32>
      %44 = arith.mulf %42, %43 : vector<8x8xf32>
      %c0_29 = arith.constant 0 : index
      %c0_30 = arith.constant 0 : index
      %45 = vector.load %arg6[%c0_29, %c0_30] : memref<8x8xf32, #tpu.memory_space<vmem>>, vector<8x8xf32>
      tpu.vector_store %arg6[%c0_29, %c0_30], %44 {strides = array<i32>} : memref<8x8xf32, #tpu.memory_space<vmem>>, vector<8x8xf32>,
      %cst_31 = arith.constant 0xFF800000 : f32
      %46 = vector.broadcast %cst_31 : f32 to vector<8x1xf32>
      %c0_32 = arith.constant 0 : index
      %c0_33 = arith.constant 0 : index
      %47 = vector.load %arg7[%c0_32, %c0_33] : memref<8x1xf32, #tpu.memory_space<vmem>>, vector<8x1xf32>
      tpu.vector_store %arg7[%c0_32, %c0_33], %46 {strides = array<i32>} : memref<8x1xf32, #tpu.memory_space<vmem>>, vector<8x1xf32>,
      %cst_34 = arith.constant 0.000000e+00 : f32
      %48 = vector.broadcast %cst_34 : f32 to vector<8x1xf32>
      %c0_35 = arith.constant 0 : index
      %c0_36 = arith.constant 0 : index
      %49 = vector.load %arg8[%c0_35, %c0_36] : memref<8x1xf32, #tpu.memory_space<vmem>>, vector<8x1xf32>
      tpu.vector_store %arg8[%c0_35, %c0_36], %48 {strides = array<i32>} : memref<8x1xf32, #tpu.memory_space<vmem>>, vector<8x1xf32>,
      %cst_37 = arith.constant 0.000000e+00 : f32
      %50 = vector.broadcast %cst_37 : f32 to vector<8x8xf32>
      %c0_38 = arith.constant 0 : index
      %c0_39 = arith.constant 0 : index
      %51 = vector.load %arg9[%c0_38, %c0_39] : memref<8x8xf32, #tpu.memory_space<vmem>>, vector<8x8xf32>
      tpu.vector_store %arg9[%c0_38, %c0_39], %50 {strides = array<i32>} : memref<8x8xf32, #tpu.memory_space<vmem>>, vector<8x8xf32>,
    } else {
    }
    %c0_2 = arith.constant 0 : index
    %c0_3 = arith.constant 0 : index
    %4 = vector.load %arg3[%c0_2, %c0_3] : memref<8x81xf32, #tpu.memory_space<vmem>>, vector<8x81xf32>
    %cst = arith.constant dense<0.000000e+00> : vector<8x8xf32>
    %5 = tpu.matmul %4, %0, %cst {dimension_numbers = #tpu.dot_dimension_numbers<[1], [1], [0], [0], [0, 0, 1, 0], [], []>} : vector<8x81xf32>, vector<8x81xf32>, vector<8x8xf32> -> vector<8x8xf32>
    %c0_4 = arith.constant 0 : index
    %c0_5 = arith.constant 0 : index
    %6 = vector.load %arg6[%c0_4, %c0_5] : memref<8x8xf32, #tpu.memory_space<vmem>>, vector<8x8xf32>
    %cst_6 = arith.constant dense<0.000000e+00> : vector<8x8xf32>
    %7 = tpu.matmul %6, %5, %cst_6 {dimension_numbers = #tpu.dot_dimension_numbers<[1], [1], [0], [0], [0, 0, 1, 0], [], []>} : vector<8x8xf32>, vector<8x8xf32>, vector<8x8xf32> -> vector<8x8xf32>
    %c8_i32 = arith.constant 8 : i32
    %8 = arith.muli %arg1, %c8_i32 : i32
    %9 = tpu.iota {dimensions = array<i32: 1>} : vector<8x8xi32>
    %10 = vector.broadcast %8 : i32 to vector<8x8xi32>
    %11 = arith.addi %10, %9 : vector<8x8xi32>
    %c2_i32 = arith.constant 2 : i32
    %12 = vector.broadcast %c2_i32 : i32 to vector<8x8xi32>
    %13 = arith.cmpi slt, %11, %12 : vector<8x8xi32>
    %cst_7 = arith.constant 0xFF800000 : f32
    %14 = vector.broadcast %cst_7 : f32 to vector<8x8xf32>
    %15 = arith.select %13, %7, %14 : vector<8x8xi1>, vector<8x8xf32>
    %c0_8 = arith.constant 0 : index
    %c0_9 = arith.constant 0 : index
    %16 = vector.load %arg7[%c0_8, %c0_9] : memref<8x1xf32, #tpu.memory_space<vmem>>, vector<8x1xf32>
    %cst_10 = arith.constant dense<0xFF800000> : vector<8xf32>
    %17 = vector.multi_reduction <maximumf>, %15, %cst_10 [1] : vector<8x8xf32> to vector<8xf32>
    %18 = vector.shape_cast %17 : vector<8xf32> to vector<8x1xf32>
    %19 = arith.maximumf %16, %18 : vector<8x1xf32>
    %20 = arith.subf %16, %19 : vector<8x1xf32>
    %21 = math.exp %20 : vector<8x1xf32>
    %22 = vector.broadcast %19 : vector<8x1xf32> to vector<8x8xf32>
    %23 = arith.subf %15, %22 : vector<8x8xf32>
    %24 = math.exp %23 : vector<8x8xf32>
    %c0_11 = arith.constant 0 : index
    %c0_12 = arith.constant 0 : index
    %25 = vector.load %arg8[%c0_11, %c0_12] : memref<8x1xf32, #tpu.memory_space<vmem>>, vector<8x1xf32>
    %26 = arith.mulf %21, %25 : vector<8x1xf32>
    %cst_13 = arith.constant dense<0.000000e+00> : vector<8xf32>
    %27 = vector.multi_reduction <add>, %24, %cst_13 [1] : vector<8x8xf32> to vector<8xf32>
    %28 = vector.shape_cast %27 : vector<8xf32> to vector<8x1xf32>
    %29 = arith.addf %26, %28 : vector<8x1xf32>
    %c0_14 = arith.constant 0 : index
    %c0_15 = arith.constant 0 : index
    %30 = vector.load %arg8[%c0_14, %c0_15] : memref<8x1xf32, #tpu.memory_space<vmem>>, vector<8x1xf32>
    tpu.vector_store %arg8[%c0_14, %c0_15], %29 {strides = array<i32>} : memref<8x1xf32, #tpu.memory_space<vmem>>, vector<8x1xf32>,
    %c0_16 = arith.constant 0 : index
    %c0_17 = arith.constant 0 : index
    %31 = vector.load %arg9[%c0_16, %c0_17] : memref<8x8xf32, #tpu.memory_space<vmem>>, vector<8x8xf32>
    %32 = vector.broadcast %21 : vector<8x1xf32> to vector<8x8xf32>
    %33 = arith.mulf %32, %31 : vector<8x8xf32>
    %cst_18 = arith.constant dense<0.000000e+00> : vector<8x8xf32>
    %34 = tpu.matmul %24, %5, %cst_18 {dimension_numbers = #tpu.dot_dimension_numbers<[1], [0], [0], [1], [0, 0, 1, 1], [], []>} : vector<8x8xf32>, vector<8x8xf32>, vector<8x8xf32> -> vector<8x8xf32>
    %35 = arith.addf %33, %34 : vector<8x8xf32>
    %c0_19 = arith.constant 0 : index
    %c0_20 = arith.constant 0 : index
    %36 = vector.load %arg9[%c0_19, %c0_20] : memref<8x8xf32, #tpu.memory_space<vmem>>, vector<8x8xf32>
    tpu.vector_store %arg9[%c0_19, %c0_20], %35 {strides = array<i32>} : memref<8x8xf32, #tpu.memory_space<vmem>>, vector<8x8xf32>,
    %c0_21 = arith.constant 0 : index
    %c0_22 = arith.constant 0 : index
    %37 = vector.load %arg7[%c0_21, %c0_22] : memref<8x1xf32, #tpu.memory_space<vmem>>, vector<8x1xf32>
    tpu.vector_store %arg7[%c0_21, %c0_22], %19 {strides = array<i32>} : memref<8x1xf32, #tpu.memory_space<vmem>>, vector<8x1xf32>,
    %c0_i32_23 = arith.constant 0 : i32
    %38 = arith.cmpi eq, %arg1, %c0_i32_23 : i32
    %39 = arith.extui %38 : i1 to i32
    %c0_i32_24 = arith.constant 0 : i32
    %40 = arith.cmpi ne, %39, %c0_i32_24 : i32
    scf.if %40 {
      %c0_25 = arith.constant 0 : index
      %c0_26 = arith.constant 0 : index
      %41 = vector.load %arg9[%c0_25, %c0_26] : memref<8x8xf32, #tpu.memory_space<vmem>>, vector<8x8xf32>
      %c0_27 = arith.constant 0 : index
      %c0_28 = arith.constant 0 : index
      %42 = vector.load %arg8[%c0_27, %c0_28] : memref<8x1xf32, #tpu.memory_space<vmem>>, vector<8x1xf32>
      %43 = tpu.reciprocal %42 : vector<8x1xf32> -> vector<8x1xf32>
      %44 = vector.broadcast %43 : vector<8x1xf32> to vector<8x8xf32>
      %45 = arith.mulf %41, %44 : vector<8x8xf32>
      %c0_29 = arith.constant 0 : index
      %c0_30 = arith.constant 0 : index
      %46 = vector.load %arg5[%c0_29, %c0_30] : memref<8x8xf32, #tpu.memory_space<vmem>>, vector<8x8xf32>
      tpu.vector_store %arg5[%c0_29, %c0_30], %45 {strides = array<i32>} : memref<8x8xf32, #tpu.memory_space<vmem>>, vector<8x8xf32>,
    } else {
    }
    return
  }
  func.func @transform_0(%arg0: i32, %arg1: i32) -> (i32, i32) {
    %c0_i32 = arith.constant 0 : i32
    %c0_i32_0 = arith.constant 0 : i32
    return %arg0, %c0_i32 : i32, i32
  }
  func.func @transform_1(%arg0: i32, %arg1: i32) -> (i32, i32) {
    %c0_i32 = arith.constant 0 : i32
    %c0_i32_0 = arith.constant 0 : i32
    return %arg1, %c0_i32 : i32, i32
  }
  func.func @transform_2(%arg0: i32, %arg1: i32) -> (i32, i32) {
    %c0_i32 = arith.constant 0 : i32
    %c0_i32_0 = arith.constant 0 : i32
    %c0_i32_1 = arith.constant 0 : i32
    return %c0_i32, %c0_i32_0 : i32, i32
  }
  func.func @transform_3(%arg0: i32, %arg1: i32) -> (i32, i32) {
    %c0_i32 = arith.constant 0 : i32
    %c0_i32_0 = arith.constant 0 : i32
    return %arg0, %c0_i32 : i32, i32
  }
}

</mosaic_0001>

<bundles_post_ra>
// kernel: tpu_custom_call.1
= control target key start
LH: loop header
LB: loop body
LE: loop exit
PB: predicated region body
PF: predicated region fallthrough
CT: control target
= control target key end

     0   :  { %8 = vsyncpa [#allocation7], 0  ;;  %s673_s0 = inlined_call_operand.hbm [shape: f32[8,81], index: 0, kind: input, shape index: {}]   ;;  %s674_s1 = inlined_call_operand.hbm [shape: f32[8,81], index: 1, kind: input, shape index: {}]   ;;  %s675_s2 = inlined_call_operand.hbm [shape: f32[8,81], index: 2, kind: input, shape index: {}]   ;;  %s676_s3 = inlined_call_operand.hbm [shape: f32[8,8], index: 3, kind: output, shape index: {}]  }
   0x1   :  { %9 = vsyncpa [#allocation10], 0 }
   0x2   :  { %10 = vsyncpa [#allocation8], 0  ;;  %s584_s12 = smov [#allocation9]   ;;  %s585_s14 = smov [#allocation6]  }
   0x3   :  { %s27_s13 = sshll.u32 %s584_s12, 4  ;;  %s17_s15 = sshll.u32 %s585_s14, 4  ;;  %s28_s13 = int_to_ptr.vmem [resolvable:$true] %s27_s13  ;;  %s18_s15 = int_to_ptr.vmem [resolvable:$true] %s17_s15 }
   0x4   :  { %s490_s18 = scalar_lea.hbm %s674_s1, 128 }
   0x5   :  { %p491_p0 = scmp.ne.s32.totalorder %s674_s1, %s490_s18  ;;  %p494_p1 = scmp.lt.u32.totalorder %s490_s18, %s674_s1 }
   0x7   :  { %p496_p2 = pnand %p494_p1, %p491_p0 }
   0x9   :  { %499 = shalt.err (!%p496_p2)
}
   0xa   :  { %s500_s23 = scalar_lea.vmem %s28_s13, 128  ;;  %p505_p4 = scmp.lt.s32.totalorder %s28_s13, %s28_s13 }
   0xb   :  { %p501_p3 = scmp.ne.s32.totalorder %s28_s13, %s500_s23  ;;  %p506_p5 = scmp.lt.s32.totalorder %s500_s23, %s500_s23 }
   0xd   :  { %p507_p6 = por %p506_p5, %p505_p4 }
   0xf   :  { %p508_p7 = pnand %p507_p6, %p501_p3 }
  0x11   :  { %511 = shalt.err (!%p508_p7)
}
  0x12   :  { %30 = dma.hbm_to_vmem [thread:$0]  %s674_s1, 128, %s28_s13, [#allocation10]  }
  0x13   :  { %s512_s28 = scalar_lea.hbm %s673_s0, 128 }
  0x14   :  { %p513_p8 = scmp.ne.s32.totalorder %s673_s0, %s512_s28  ;;  %p516_p9 = scmp.lt.u32.totalorder %s512_s28, %s673_s0 }
  0x16   :  { %p518_p10 = pnand %p516_p9, %p513_p8 }
  0x18   :  { %521 = shalt.err (!%p518_p10)
}
  0x19   :  { %s522_s6 = scalar_lea.vmem %s18_s15, 128  ;;  %p527_p12 = scmp.lt.s32.totalorder %s18_s15, %s18_s15 }
  0x1a   :  { %p523_p11 = scmp.ne.s32.totalorder %s18_s15, %s522_s6  ;;  %p528_p13 = scmp.lt.s32.totalorder %s522_s6, %s522_s6 }
  0x1c   :  { %p529_p0 = por %p528_p13, %p527_p12 }
  0x1e   :  { %p530_p1 = pnand %p529_p0, %p523_p11 }
  0x20   :  { %533 = shalt.err (!%p530_p1)
}
  0x21   :  { %20 = dma.hbm_to_vmem [thread:$0]  %s673_s0, 128, %s18_s15, [#allocation7]  }
  0x22   :  { %s586_s8 = smov [#allocation11]   ;;  %s534_s12 = scalar_lea.hbm %s675_s2, 128 }
  0x23   :  { %s37_s9 = sshll.u32 %s586_s8, 4  ;;  %p535_p2 = scmp.ne.s32.totalorder %s675_s2, %s534_s12  ;;  %s38_s9 = int_to_ptr.vmem [resolvable:$true] %s37_s9 }
  0x24   :  { %p538_p3 = scmp.lt.u32.totalorder %s534_s12, %s675_s2 }
  0x26   :  { %p540_p4 = pnand %p538_p3, %p535_p2 }
  0x28   :  { %543 = shalt.err (!%p540_p4)
}
  0x29   :  { %s544_s18 = scalar_lea.vmem %s38_s9, 128  ;;  %p549_p6 = scmp.lt.s32.totalorder %s38_s9, %s38_s9 }
  0x2a   :  { %p545_p5 = scmp.ne.s32.totalorder %s38_s9, %s544_s18  ;;  %p550_p7 = scmp.lt.s32.totalorder %s544_s18, %s544_s18 }
  0x2c   :  { %p551_p8 = por %p550_p7, %p549_p6 }
  0x2e   :  { %p552_p9 = pnand %p551_p8, %p545_p5 }
  0x30   :  { %555 = shalt.err (!%p552_p9)
}
  0x31   :  { %40 = dma.hbm_to_vmem [thread:$0]  %s675_s2, 128, %s38_s9, [#allocation10]  }
  0x32   :  { %578 = dma.done.wait [#allocation7], 128  }
  0x33   :  { %579 = vsyncadd [#allocation7], 4294967168 }
  0x34   :  { %580 = dma.done.wait [#allocation10], 256  }
  0x35   :  { %581 = vsyncadd [#allocation10], 4294967040  ;;  %v587_v0 = vmov 0.0   ;;  %vm588_vm0 = vmmov 0   ;;  %vm56_vm1 = vcmask 662528   ;;  %v50_v1 = vld [vmem:[#allocation11] sm:$0xff]  ;;  %v297_v11 = vlaneseq }
  0x36   :  { %454 = vmatprep.subr.mxu0 %v587_v0  ;;  %456 = vmatprep.mubr.msk.f32.mxu0 %vm588_vm0, %v587_v0  ;;  %v55_v2 = vld [vmem:[#allocation6] sm:$0xff]  ;;  %v140_v3 = vld [vmem:[#allocation9] sm:$0xff]  ;;  %vm134_vm2 = vcmask 64512   ;;  %vm136_vm3 = vcmask 7168   ;;  %v589_v10 = vmov -inf   ;;  %v590_v17 = vmov 0  }
  0x37   :  { %459 = vmatprep.subr.mxu1 %v587_v0  ;;  %461 = vmatprep.mubr.msk.f32.mxu1 %vm588_vm0, %v587_v0  ;;  %139 = vst.msk [vmem:[#allocation5] sm:$0xff] %vm134_vm2, %v587_v0  ;;  %v298_v12 = vand.u32 127, %v297_v11  ;;  %s591_s2 = smov [#allocation12]  }
  0x38   :  { %455 = vmatpush3.xpose.msk.msra.mxu0 %vm56_vm1, %v50_v1  ;;  %460 = vmatpush3.xpose.msk.msra.mxu1 %vm56_vm1, %v50_v1  ;;  %137 = vst.msk [vmem:[#allocation3] sm:$0xff] %vm136_vm3, %v589_v10  ;;  %138 = vst.msk [vmem:[#allocation4] sm:$0xff] %vm136_vm3, %v587_v0  ;;  %s429_s19 = sshll.u32 %s591_s2, 4  ;;  %s430_s19 = int_to_ptr.vmem [resolvable:$true] %s429_s19 }
  0x39   :  { %464 = vmatprep.subr.mxu0 %v587_v0  ;;  %469 = vmatprep.subr.mxu1 %v587_v0  ;;  %vm301_vm4 = vcmp.lt.s32.totalorder %v298_v12, 2  ;;  %s556_s20 = scalar_lea.vmem %s430_s19, 128  ;;  %p561_p11 = scmp.lt.s32.totalorder %s430_s19, %s430_s19 }
  0x3a   :  { %482 = vset.pattern.permute.xlu0 %v590_v17  ;;  %483 = vset.pattern.permute.xlu1 %v590_v17  ;;  %p557_p10 = scmp.ne.s32.totalorder %s430_s19, %s556_s20  ;;  %p562_p12 = scmp.lt.s32.totalorder %s556_s20, %s556_s20 }
  0x3b   :  { %457 = vmatmul.mubr.msk.f32.vlgmr.msra.gmra.mrb[0].mxu0 %vm56_vm1, %v55_v2  ;;  %462 = vmatmul.mubr.msk.f32.vlgmr.msra.gmra.mrb[0].mxu1 %vm56_vm1, %v140_v3 }
  0x3c   :  { %466 = vmatprep.mubr.msk.f32.mxu0 %vm588_vm0, %v587_v0  ;;  %471 = vmatprep.mubr.msk.f32.mxu1 %vm588_vm0, %v587_v0  ;;  %p563_p13 = por %p562_p12, %p561_p11 }
  0x3e   :  { %v327_v35 = vld [vmem:[#allocation5] sm:$0xff]  ;;  %p564_p0 = pnand %p563_p13, %p557_p10 }
  0x3f   :  { %v303_v18 = vld [vmem:[#allocation3] sm:$0xff]  ;;  %v319_v29 = vld [vmem:[#allocation4] sm:$0xff] }
 0x10e   :  { %v129_v4 = vpop.f32.mrb[0].mxu0  ;;  %v214_v5 = vpop.f32.mrb[0].mxu1 }
 0x10f   :  { %v133_v6 = vmul.f32 2.828427, %v129_v4  ;;  %v458_v7 = vpop.f32.mrb[1].mxu0  ;;  %v463_v8 = vpop.f32.mrb[1].mxu1  ;;  %465 = vmatpush3.xpose.msk.msra.mxu0 %vm134_vm2, %v214_v5  ;;  %470 = vmatpush3.msra.mxu1 %v214_v5 }
 0x111   :  { %135 = vst.msk [vmem:[#allocation2] sm:$0xff] %vm134_vm2, %v133_v6 }
 0x118   :  { %v218_v9 = vld [vmem:[#allocation2] sm:$0xff] }
 0x119   :  { %467 = vmatmul.mubr.msk.f32.vlgmr.msra.gmra.mrb[2].mxu0 %vm134_vm2, %v218_v9 }
 0x1ec   :  { %v292_v13 = vpop.f32.mrb[2].mxu0 }
 0x1ed   :  { %v302_v14 = vsel %vm301_vm4, %v292_v13, -inf  ;;  %v468_v15 = vpop.f32.mrb[3].mxu0 }
 0x1ee   :  { %v304_v16 = vsel %vm134_vm2, %v302_v14, -inf }
 0x1ef   :  { %305 = vmax.xlane.f32.xlu0 %v304_v16 }
 0x27c   :  { %v306_v19 = vpop.xlane.xlu0 %305 }
 0x27d   :  { %v307_v20 = vmax.f32 %v303_v18, %v306_v19 }
 0x27f   :  { %v308_v21 = vsub.f32 %v303_v18, %v307_v20  ;;  %409 = vst.msk [vmem:[#allocation3] sm:$0xff] %vm136_vm3, %v307_v20  ;;  %313 = vperm.xlu0 %482, %v307_v20  }
 0x281   :  { %v309_v27 = vmul.f32 1.442695, %v308_v21 }
 0x2fe   :  { %v314_v22 = vpop.permute.xlu0 %313 }
 0x2ff   :  { %v316_v23 = vsub.f32 %v302_v14, %v314_v22 }
 0x301   :  { %v317_v24 = vmul.f32 1.442695, %v316_v23 }
 0x303   :  { %484 = vpow2.f32 %v317_v24 }
 0x304   :  { %486 = vpow2.f32 %v309_v27 }
 0x30d   :  { %v485_v25 = vpop.eup %484 }
 0x30e   :  { %472 = vmatmul.mubr.msk.f32.vlgmr.msra.gmra.mrb[2].mxu1 %vm134_vm2, %v485_v25  ;;  %v321_v26 = vsel %vm134_vm2, %v485_v25, 0.0  ;;  %v487_v28 = vpop.eup %486 }
 0x30f   :  { %322 = vadd.xlane.f32.xlu1 %v321_v26  ;;  %v320_v30 = vmul.f32 %v487_v28, %v319_v29 }
 0x320   :  { %330 = vperm.xlu1 %483, %v487_v28  }
 0x39c   :  { %v323_v31 = vpop.xlane.xlu1 %322 }
 0x39d   :  { %v324_v32 = vadd.f32 %v323_v31, %v320_v30 }
 0x39f   :  { %326 = vst.msk [vmem:[#allocation4] sm:$0xff] %vm136_vm3, %v324_v32 }
 0x3a0   :  { %v331_v36 = vpop.permute.xlu1 %330 }
 0x3a1   :  { %v333_v37 = vmul.f32 %v331_v36, %v327_v35 }
 0x3a6   :  { %v414_v33 = vld [vmem:[#allocation4] sm:$0xff] }
 0x3a7   :  { %488 = vrcp.f32 %v414_v33 }
 0x3b1   :  { %v489_v34 = vpop.eup %488 }
 0x3b2   :  { %418 = vperm.xlu1 %483, %v489_v34  }
 0x3e1   :  { %v403_v38 = vpop.f32.mrb[2].mxu1 }
 0x3e2   :  { %v407_v39 = vadd.f32 %v403_v38, %v333_v37  ;;  %v473_v40 = vpop.f32.mrb[3].mxu1 }
 0x3e4   :  { %408 = vst.msk [vmem:[#allocation5] sm:$0xff] %vm134_vm2, %v407_v39 }
 0x3eb   :  { %v413_v41 = vld [vmem:[#allocation5] sm:$0xff] }
 0x431   :  { %v419_v42 = vpop.permute.xlu1 %418 }
 0x432   :  { %v421_v43 = vmul.f32 %v419_v42, %v413_v41 }
 0x434   :  { %422 = vst.msk [vmem:[#allocation12] sm:$0xff] %vm134_vm2, %v421_v43 }
 0x435   :  { %567 = shalt.err (!%p564_p0)
}
 0x436   :  { %s568_s23 = scalar_lea.hbm %s676_s3, 128 }
 0x437   :  { %p569_p1 = scmp.ne.s32.totalorder %s676_s3, %s568_s23  ;;  %p572_p2 = scmp.lt.u32.totalorder %s568_s23, %s676_s3 }
 0x439   :  { %p574_p3 = pnand %p572_p2, %p569_p1 }
 0x43b   :  { %577 = shalt.err (!%p574_p3)
}
 0x43c   :  { %432 = dma.vmem_to_hbm [thread:$0]  %s430_s19, 128, %s676_s3, [#allocation8]  }
 0x43d   :  { %582 = dma.done.wait [#allocation8], 128  }
 0x43e   :  { %583 = vsyncadd [#allocation8], 4294967168 }
 0x43f   :  { %436 = vsyncpa [#allocation7], 1 }
 0x440   :  { %437 = vsyncpa [#allocation10], 1 }
 0x441   :  { %438 = vsyncpa [#allocation8], 1 }

</bundles_post_ra>
